<compile_context>
chip_gen: v7x
topology: tpu7x:2x2x1
jax: 0.10.0
libtpu: 0.0.40
codegen_flags: <defaults>
</compile_context>

<pallas_src>
import jax
import jax.numpy as jnp
from jax.experimental import pallas as pl
from jax.experimental.pallas import tpu as pltpu

# ---- problem configuration (small, consistent with the module) -------------
N, CIN, COUT, H, W = 2, 4, 8, 16, 16       # batch / channels / spatial
K = 3                                      # kernel_size (int, as asserted)
PAD = 1                                    # conv kwargs -> padding=1, stride=1
R = 2                                      # LoRA rank
LORA_ALPHA = 4
SCALING = LORA_ALPHA / R
OH = H + 2 * PAD - K + 1                   # 16
OW = W + 2 * PAD - K + 1                   # 16
S = OH * OW                                # 256 output columns (multiple of 128)
WP = W + 2 * PAD                           # 18  padded row width (slab stride)
HP = H + 2 * PAD + 2                       # 20  (2 extra zero rows keep every shifted slab in-bounds)
LF = HP * WP                               # 360 flattened padded image length
SP = OH * WP                               # 288 strided output slab (2 don't-care cols per row)
CKK = CIN * K * K                          # 36
KRK = K * R * K                            # 18


# ---- fused kernel: LoRA merge + conv via shifted accumulating matmuls -------
def conv_lora_kernel(w_ref, bflat_ref, abig_ref, bias_ref, x_ref, o_ref):
    # w_ref:     (COUT, CKK)  f32   base weight, columns ordered (kh, kw, ci)
    # bflat_ref: (COUT, KRK)  bf16  lora_B.reshape(COUT, K*R*K)
    # abig_ref:  (KRK, CKK)   bf16  kron(I_K, lora_A), columns permuted to (kh, kw, ci)
    # bias_ref:  (COUT, 1)    f32
    # x_ref:     (1, CIN, LF) bf16  zero-padded image, spatially flattened (row stride WP)
    # o_ref:     (1, COUT, S) f32

    # LoRA merge (f32 add), recomputed per step: negligible work and it keeps the
    # grid axis legally "parallel" (no cross-step scratch dependency).
    delta = jnp.dot(bflat_ref[...], abig_ref[...],
                    preferred_element_type=jnp.float32)               # (COUT, CKK)
    w_eff = (w_ref[...] + SCALING * delta).astype(jnp.bfloat16)       # bf16 MXU operand

    # Conv as K*K accumulating shifted matmuls: tap (kh, kw) of the padded image
    # is the contiguous slab x[:, kh*WP+kw : kh*WP+kw + OH*WP].
    x = x_ref[0]                                                      # (CIN, LF) bf16
    acc = jnp.zeros((COUT, SP), jnp.float32)
    for t in range(K * K):
        kh, kw = divmod(t, K)
        w_tap = w_eff[:, t * CIN:(t + 1) * CIN]                       # (COUT, CIN) bf16
        x_tap = x[:, kh * WP + kw: kh * WP + kw + SP]                 # (CIN, SP)   bf16
        acc = acc + jnp.dot(w_tap, x_tap, preferred_element_type=jnp.float32)

    # Bias + compaction: drop the 2 pad columns of every output row, store the
    # lane-dense (COUT, OH*OW) block.
    bias = bias_ref[...]                                              # (COUT, 1) f32
    for oh in range(OH):
        row = acc[:, oh * WP: oh * WP + OW] + bias                    # (COUT, OW) f32
        o_ref[0, :, oh * OW:(oh + 1) * OW] = row.astype(o_ref.dtype)


# ---- wrapper ----------------------------------------------------------------
@jax.jit
def conv_lora_forward(x, conv_w, conv_b, lora_A, lora_B):
    """ConvLoRA.forward for r>0, not merged (groups=1). x is NCHW float32."""
    # --- layout plumbing only (zero FLOPs, no im2col) ---
    # base weight columns in (kh, kw, ci) order -> per-tap weights are contiguous
    w_taps = conv_w.transpose(0, 2, 3, 1).reshape(COUT, CKK)
    b_flat = lora_B.reshape(COUT, KRK).astype(jnp.bfloat16)
    # kron(I_K, A) gives delta columns in (ci, kh, kw) order (exact .view(W.shape)
    # semantics); permute its columns to the same (kh, kw, ci) order as w_taps.
    a_big = jnp.kron(jnp.eye(K, dtype=lora_A.dtype), lora_A)          # (KRK, CKK)
    a_big = (a_big.reshape(KRK, CIN, K, K).transpose(0, 2, 3, 1)
             .reshape(KRK, CKK)).astype(jnp.bfloat16)
    bias2d = conv_b.reshape(COUT, 1)

    # zero-pad spatially (+2 extra bottom rows so every shifted slab stays in
    # bounds) and flatten (H, W) -> each conv tap is one contiguous lane slice.
    xp = jnp.pad(x, ((0, 0), (0, 0), (PAD, PAD + 2), (PAD, PAD)))     # (N, CIN, HP, WP)
    x_flat = xp.reshape(N, CIN, LF).astype(jnp.bfloat16)              # bf16 halves DMA

    flops = N * (2 * COUT * KRK * CKK + 2 * COUT * CIN * SP * K * K)
    bytes_accessed = (4 * (COUT * CKK + COUT + N * COUT * S)
                      + 2 * (COUT * KRK + KRK * CKK + N * CIN * LF))

    out = pl.pallas_call(
        conv_lora_kernel,
        grid=(N,),
        in_specs=[
            pl.BlockSpec((COUT, CKK), lambda n: (0, 0)),
            pl.BlockSpec((COUT, KRK), lambda n: (0, 0)),
            pl.BlockSpec((KRK, CKK), lambda n: (0, 0)),
            pl.BlockSpec((COUT, 1), lambda n: (0, 0)),
            pl.BlockSpec((1, CIN, LF), lambda n: (n, 0, 0)),
        ],
        out_specs=pl.BlockSpec((1, COUT, S), lambda n: (n, 0, 0)),
        out_shape=jax.ShapeDtypeStruct((N, COUT, S), jnp.float32),
        compiler_params=pltpu.CompilerParams(
            dimension_semantics=("parallel",)),
        cost_estimate=pl.CostEstimate(flops=flops, transcendentals=0,
                                      bytes_accessed=bytes_accessed),
    )(w_taps, b_flat, a_big, bias2d, x_flat)

    # (N, COUT, OH*OW) -> (N, COUT, OH, OW): free row-major view, no transpose.
    return out.reshape(N, COUT, OH, OW)


if __name__ == "__main__":
    key = jax.random.PRNGKey(0)
    k1, k2, k3, k4, k5 = jax.random.split(key, 5)

    # deterministic parameter init (shapes from ConvLoRA.__init__)
    x = jax.random.normal(k1, (N, CIN, H, W), jnp.float32)
    fan_in = CIN * K * K
    bound = 1.0 / (fan_in ** 0.5)
    conv_w = jax.random.uniform(k2, (COUT, CIN, K, K), jnp.float32, -bound, bound)
    conv_b = jax.random.uniform(k3, (COUT,), jnp.float32, -bound, bound)
    # reset_parameters() zeroes lora_B; use small random values instead so the
    # LoRA path is actually exercised (synthetic weights, not a checkpoint).
    lora_A = jax.random.uniform(k4, (R * K, CIN * K), jnp.float32, -0.5, 0.5)
    lora_B = jax.random.uniform(k5, (COUT * K, R * K), jnp.float32, -0.5, 0.5)

    out = jax.block_until_ready(conv_lora_forward(x, conv_w, conv_b, lora_A, lora_B))
    assert out.shape == (N, COUT, OH, OW)

    hp = jax.lax.Precision.HIGHEST

    # (1) exact f32 semantics of the PyTorch module
    w_eff_f32 = conv_w + SCALING * jnp.matmul(lora_B, lora_A,
                                              precision=hp).reshape(conv_w.shape)
    ref_f32 = jax.lax.conv_general_dilated(
        x, w_eff_f32, (1, 1), ((PAD, PAD), (PAD, PAD)),
        dimension_numbers=("NCHW", "OIHW", "NCHW"), precision=hp,
    ) + conv_b[None, :, None, None]

    # (2) same math with the kernel's bf16 operand rounding mirrored (f32 accum)
    bf = lambda a: a.astype(jnp.bfloat16).astype(jnp.float32)
    delta_bf = jnp.matmul(bf(lora_B), bf(lora_A), precision=hp).reshape(conv_w.shape)
    w_eff_bf = bf(conv_w + SCALING * delta_bf)
    ref_bf = jax.lax.conv_general_dilated(
        bf(x), w_eff_bf, (1, 1), ((PAD, PAD), (PAD, PAD)),
        dimension_numbers=("NCHW", "OIHW", "NCHW"), precision=hp,
    ) + conv_b[None, :, None, None]

    err_bf = float(jnp.max(jnp.abs(out - ref_bf)))
    err_f32 = float(jnp.max(jnp.abs(out - ref_f32)))
    # tight: validates taps / layout / merge against the bf16-operand math
    assert jnp.allclose(out, ref_bf, atol=2e-2, rtol=2e-2), err_bf
    # loose: fidelity to the original f32 module (slack = bf16 operand rounding)
    assert jnp.allclose(out, ref_f32, atol=1e-1, rtol=2e-2), err_f32

    print("KERNEL_OK")
</pallas_src>

<mosaic_0001>
module attributes {stable_mosaic.version = 11 : i64} {
  func.func @conv_lora_kernel(%arg0: i32, %arg1: memref<8x36xf32, #tpu.memory_space<vmem>>, %arg2: memref<8x18xbf16, #tpu.memory_space<vmem>>, %arg3: memref<18x36xbf16, #tpu.memory_space<vmem>>, %arg4: memref<8x1xf32, #tpu.memory_space<vmem>>, %arg5: memref<1x4x360xbf16, #tpu.memory_space<vmem>>, %arg6: memref<1x8x256xf32, #tpu.memory_space<vmem>>) attributes {dimension_semantics = [#tpu.dimension_semantics<parallel>], iteration_bounds = array<i64: 2>, scalar_prefetch = 0 : i64, scratch_operands = 0 : i64, tpu.core_type = #tpu.core_type<tc>, window_params = [{pipeline_mode = #tpu.pipeline_mode<synchronous>, transform_indices = @transform_0, window_bounds = array<i64: 8, 36>}, {pipeline_mode = #tpu.pipeline_mode<synchronous>, transform_indices = @transform_1, window_bounds = array<i64: 8, 18>}, {pipeline_mode = #tpu.pipeline_mode<synchronous>, transform_indices = @transform_2, window_bounds = array<i64: 18, 36>}, {pipeline_mode = #tpu.pipeline_mode<synchronous>, transform_indices = @transform_3, window_bounds = array<i64: 8, 1>}, {transform_indices = @transform_4, window_bounds = array<i64: 1, 4, 360>}, {transform_indices = @transform_5, window_bounds = array<i64: 1, 8, 256>}]} {
    %c0 = arith.constant 0 : index
    %c0_0 = arith.constant 0 : index
    %0 = vector.load %arg2[%c0, %c0_0] : memref<8x18xbf16, #tpu.memory_space<vmem>>, vector<8x18xbf16>
    %c0_1 = arith.constant 0 : index
    %c0_2 = arith.constant 0 : index
    %1 = vector.load %arg3[%c0_1, %c0_2] : memref<18x36xbf16, #tpu.memory_space<vmem>>, vector<18x36xbf16>
    %cst = arith.constant dense<0.000000e+00> : vector<8x36xf32>
    %2 = tpu.matmul %0, %1, %cst {dimension_numbers = #tpu.dot_dimension_numbers<[1], [0], [0], [1], [0, 0, 1, 1], [], []>} : vector<8x18xbf16>, vector<18x36xbf16>, vector<8x36xf32> -> vector<8x36xf32>
    %c0_3 = arith.constant 0 : index
    %c0_4 = arith.constant 0 : index
    %3 = vector.load %arg1[%c0_3, %c0_4] : memref<8x36xf32, #tpu.memory_space<vmem>>, vector<8x36xf32>
    %cst_5 = arith.constant 2.000000e+00 : f32
    %4 = vector.broadcast %cst_5 : f32 to vector<8x36xf32>
    %5 = arith.mulf %4, %2 : vector<8x36xf32>
    %6 = arith.addf %3, %5 : vector<8x36xf32>
    %7 = arith.truncf %6 : vector<8x36xf32> to vector<8x36xbf16>
    %c0_6 = arith.constant 0 : index
    %c0_7 = arith.constant 0 : index
    %c0_8 = arith.constant 0 : index
    %8 = vector.load %arg5[%c0_6, %c0_7, %c0_8] : memref<1x4x360xbf16, #tpu.memory_space<vmem>>, vector<1x4x360xbf16>
    %9 = vector.shape_cast %8 : vector<1x4x360xbf16> to vector<4x360xbf16>
    %cst_9 = arith.constant 0.000000e+00 : f32
    %10 = vector.broadcast %cst_9 : f32 to vector<8x288xf32>
    %11 = vector.extract_strided_slice %7 {offsets = [0, 0], sizes = [8, 4], strides = [1, 1]} : vector<8x36xbf16> to vector<8x4xbf16>
    %12 = vector.extract_strided_slice %9 {offsets = [0, 0], sizes = [4, 288], strides = [1, 1]} : vector<4x360xbf16> to vector<4x288xbf16>
    %cst_10 = arith.constant dense<0.000000e+00> : vector<8x288xf32>
    %13 = tpu.matmul %11, %12, %cst_10 {dimension_numbers = #tpu.dot_dimension_numbers<[1], [0], [0], [1], [0, 0, 1, 1], [], []>} : vector<8x4xbf16>, vector<4x288xbf16>, vector<8x288xf32> -> vector<8x288xf32>
    %14 = arith.addf %10, %13 : vector<8x288xf32>
    %15 = vector.extract_strided_slice %7 {offsets = [0, 4], sizes = [8, 4], strides = [1, 1]} : vector<8x36xbf16> to vector<8x4xbf16>
    %16 = vector.extract_strided_slice %9 {offsets = [0, 1], sizes = [4, 288], strides = [1, 1]} : vector<4x360xbf16> to vector<4x288xbf16>
    %cst_11 = arith.constant dense<0.000000e+00> : vector<8x288xf32>
    %17 = tpu.matmul %15, %16, %cst_11 {dimension_numbers = #tpu.dot_dimension_numbers<[1], [0], [0], [1], [0, 0, 1, 1], [], []>} : vector<8x4xbf16>, vector<4x288xbf16>, vector<8x288xf32> -> vector<8x288xf32>
    %18 = arith.addf %14, %17 : vector<8x288xf32>
    %19 = vector.extract_strided_slice %7 {offsets = [0, 8], sizes = [8, 4], strides = [1, 1]} : vector<8x36xbf16> to vector<8x4xbf16>
    %20 = vector.extract_strided_slice %9 {offsets = [0, 2], sizes = [4, 288], strides = [1, 1]} : vector<4x360xbf16> to vector<4x288xbf16>
    %cst_12 = arith.constant dense<0.000000e+00> : vector<8x288xf32>
    %21 = tpu.matmul %19, %20, %cst_12 {dimension_numbers = #tpu.dot_dimension_numbers<[1], [0], [0], [1], [0, 0, 1, 1], [], []>} : vector<8x4xbf16>, vector<4x288xbf16>, vector<8x288xf32> -> vector<8x288xf32>
    %22 = arith.addf %18, %21 : vector<8x288xf32>
    %23 = vector.extract_strided_slice %7 {offsets = [0, 12], sizes = [8, 4], strides = [1, 1]} : vector<8x36xbf16> to vector<8x4xbf16>
    %24 = vector.extract_strided_slice %9 {offsets = [0, 18], sizes = [4, 288], strides = [1, 1]} : vector<4x360xbf16> to vector<4x288xbf16>
    %cst_13 = arith.constant dense<0.000000e+00> : vector<8x288xf32>
    %25 = tpu.matmul %23, %24, %cst_13 {dimension_numbers = #tpu.dot_dimension_numbers<[1], [0], [0], [1], [0, 0, 1, 1], [], []>} : vector<8x4xbf16>, vector<4x288xbf16>, vector<8x288xf32> -> vector<8x288xf32>
    %26 = arith.addf %22, %25 : vector<8x288xf32>
    %27 = vector.extract_strided_slice %7 {offsets = [0, 16], sizes = [8, 4], strides = [1, 1]} : vector<8x36xbf16> to vector<8x4xbf16>
    %28 = vector.extract_strided_slice %9 {offsets = [0, 19], sizes = [4, 288], strides = [1, 1]} : vector<4x360xbf16> to vector<4x288xbf16>
    %cst_14 = arith.constant dense<0.000000e+00> : vector<8x288xf32>
    %29 = tpu.matmul %27, %28, %cst_14 {dimension_numbers = #tpu.dot_dimension_numbers<[1], [0], [0], [1], [0, 0, 1, 1], [], []>} : vector<8x4xbf16>, vector<4x288xbf16>, vector<8x288xf32> -> vector<8x288xf32>
    %30 = arith.addf %26, %29 : vector<8x288xf32>
    %31 = vector.extract_strided_slice %7 {offsets = [0, 20], sizes = [8, 4], strides = [1, 1]} : vector<8x36xbf16> to vector<8x4xbf16>
    %32 = vector.extract_strided_slice %9 {offsets = [0, 20], sizes = [4, 288], strides = [1, 1]} : vector<4x360xbf16> to vector<4x288xbf16>
    %cst_15 = arith.constant dense<0.000000e+00> : vector<8x288xf32>
    %33 = tpu.matmul %31, %32, %cst_15 {dimension_numbers = #tpu.dot_dimension_numbers<[1], [0], [0], [1], [0, 0, 1, 1], [], []>} : vector<8x4xbf16>, vector<4x288xbf16>, vector<8x288xf32> -> vector<8x288xf32>
    %34 = arith.addf %30, %33 : vector<8x288xf32>
    %35 = vector.extract_strided_slice %7 {offsets = [0, 24], sizes = [8, 4], strides = [1, 1]} : vector<8x36xbf16> to vector<8x4xbf16>
    %36 = vector.extract_strided_slice %9 {offsets = [0, 36], sizes = [4, 288], strides = [1, 1]} : vector<4x360xbf16> to vector<4x288xbf16>
    %cst_16 = arith.constant dense<0.000000e+00> : vector<8x288xf32>
    %37 = tpu.matmul %35, %36, %cst_16 {dimension_numbers = #tpu.dot_dimension_numbers<[1], [0], [0], [1], [0, 0, 1, 1], [], []>} : vector<8x4xbf16>, vector<4x288xbf16>, vector<8x288xf32> -> vector<8x288xf32>
    %38 = arith.addf %34, %37 : vector<8x288xf32>
    %39 = vector.extract_strided_slice %7 {offsets = [0, 28], sizes = [8, 4], strides = [1, 1]} : vector<8x36xbf16> to vector<8x4xbf16>
    %40 = vector.extract_strided_slice %9 {offsets = [0, 37], sizes = [4, 288], strides = [1, 1]} : vector<4x360xbf16> to vector<4x288xbf16>
    %cst_17 = arith.constant dense<0.000000e+00> : vector<8x288xf32>
    %41 = tpu.matmul %39, %40, %cst_17 {dimension_numbers = #tpu.dot_dimension_numbers<[1], [0], [0], [1], [0, 0, 1, 1], [], []>} : vector<8x4xbf16>, vector<4x288xbf16>, vector<8x288xf32> -> vector<8x288xf32>
    %42 = arith.addf %38, %41 : vector<8x288xf32>
    %43 = vector.extract_strided_slice %7 {offsets = [0, 32], sizes = [8, 4], strides = [1, 1]} : vector<8x36xbf16> to vector<8x4xbf16>
    %44 = vector.extract_strided_slice %9 {offsets = [0, 38], sizes = [4, 288], strides = [1, 1]} : vector<4x360xbf16> to vector<4x288xbf16>
    %cst_18 = arith.constant dense<0.000000e+00> : vector<8x288xf32>
    %45 = tpu.matmul %43, %44, %cst_18 {dimension_numbers = #tpu.dot_dimension_numbers<[1], [0], [0], [1], [0, 0, 1, 1], [], []>} : vector<8x4xbf16>, vector<4x288xbf16>, vector<8x288xf32> -> vector<8x288xf32>
    %46 = arith.addf %42, %45 : vector<8x288xf32>
    %c0_19 = arith.constant 0 : index
    %c0_20 = arith.constant 0 : index
    %47 = vector.load %arg4[%c0_19, %c0_20] : memref<8x1xf32, #tpu.memory_space<vmem>>, vector<8x1xf32>
    %48 = vector.extract_strided_slice %46 {offsets = [0, 0], sizes = [8, 16], strides = [1, 1]} : vector<8x288xf32> to vector<8x16xf32>
    %49 = vector.broadcast %47 : vector<8x1xf32> to vector<8x16xf32>
    %50 = arith.addf %48, %49 : vector<8x16xf32>
    %c0_21 = arith.constant 0 : index
    %c0_22 = arith.constant 0 : index
    %c0_23 = arith.constant 0 : index
    %51 = vector.load %arg6[%c0_21, %c0_22, %c0_23] : memref<1x8x256xf32, #tpu.memory_space<vmem>>, vector<1x8x16xf32>
    %52 = vector.shape_cast %51 : vector<1x8x16xf32> to vector<8x16xf32>
    %53 = vector.shape_cast %50 : vector<8x16xf32> to vector<1x8x16xf32>
    tpu.vector_store %arg6[%c0_21, %c0_22, %c0_23], %53 {strides = array<i32>} : memref<1x8x256xf32, #tpu.memory_space<vmem>>, vector<1x8x16xf32>,
    %54 = vector.extract_strided_slice %46 {offsets = [0, 18], sizes = [8, 16], strides = [1, 1]} : vector<8x288xf32> to vector<8x16xf32>
    %55 = vector.broadcast %47 : vector<8x1xf32> to vector<8x16xf32>
    %56 = arith.addf %54, %55 : vector<8x16xf32>
    %c0_24 = arith.constant 0 : index
    %c0_25 = arith.constant 0 : index
    %c16 = arith.constant 16 : index
    %57 = vector.load %arg6[%c0_24, %c0_25, %c16] : memref<1x8x256xf32, #tpu.memory_space<vmem>>, vector<1x8x16xf32>
    %58 = vector.shape_cast %57 : vector<1x8x16xf32> to vector<8x16xf32>
    %59 = vector.shape_cast %56 : vector<8x16xf32> to vector<1x8x16xf32>
    tpu.vector_store %arg6[%c0_24, %c0_25, %c16], %59 {strides = array<i32>} : memref<1x8x256xf32, #tpu.memory_space<vmem>>, vector<1x8x16xf32>,
    %60 = vector.extract_strided_slice %46 {offsets = [0, 36], sizes = [8, 16], strides = [1, 1]} : vector<8x288xf32> to vector<8x16xf32>
    %61 = vector.broadcast %47 : vector<8x1xf32> to vector<8x16xf32>
    %62 = arith.addf %60, %61 : vector<8x16xf32>
    %c0_26 = arith.constant 0 : index
    %c0_27 = arith.constant 0 : index
    %c32 = arith.constant 32 : index
    %63 = vector.load %arg6[%c0_26, %c0_27, %c32] : memref<1x8x256xf32, #tpu.memory_space<vmem>>, vector<1x8x16xf32>
    %64 = vector.shape_cast %63 : vector<1x8x16xf32> to vector<8x16xf32>
    %65 = vector.shape_cast %62 : vector<8x16xf32> to vector<1x8x16xf32>
    tpu.vector_store %arg6[%c0_26, %c0_27, %c32], %65 {strides = array<i32>} : memref<1x8x256xf32, #tpu.memory_space<vmem>>, vector<1x8x16xf32>,
    %66 = vector.extract_strided_slice %46 {offsets = [0, 54], sizes = [8, 16], strides = [1, 1]} : vector<8x288xf32> to vector<8x16xf32>
    %67 = vector.broadcast %47 : vector<8x1xf32> to vector<8x16xf32>
    %68 = arith.addf %66, %67 : vector<8x16xf32>
    %c0_28 = arith.constant 0 : index
    %c0_29 = arith.constant 0 : index
    %c48 = arith.constant 48 : index
    %69 = vector.load %arg6[%c0_28, %c0_29, %c48] : memref<1x8x256xf32, #tpu.memory_space<vmem>>, vector<1x8x16xf32>
    %70 = vector.shape_cast %69 : vector<1x8x16xf32> to vector<8x16xf32>
    %71 = vector.shape_cast %68 : vector<8x16xf32> to vector<1x8x16xf32>
    tpu.vector_store %arg6[%c0_28, %c0_29, %c48], %71 {strides = array<i32>} : memref<1x8x256xf32, #tpu.memory_space<vmem>>, vector<1x8x16xf32>,
    %72 = vector.extract_strided_slice %46 {offsets = [0, 72], sizes = [8, 16], strides = [1, 1]} : vector<8x288xf32> to vector<8x16xf32>
    %73 = vector.broadcast %47 : vector<8x1xf32> to vector<8x16xf32>
    %74 = arith.addf %72, %73 : vector<8x16xf32>
    %c0_30 = arith.constant 0 : index
    %c0_31 = arith.constant 0 : index
    %c64 = arith.constant 64 : index
    %75 = vector.load %arg6[%c0_30, %c0_31, %c64] : memref<1x8x256xf32, #tpu.memory_space<vmem>>, vector<1x8x16xf32>
    %76 = vector.shape_cast %75 : vector<1x8x16xf32> to vector<8x16xf32>
    %77 = vector.shape_cast %74 : vector<8x16xf32> to vector<1x8x16xf32>
    tpu.vector_store %arg6[%c0_30, %c0_31, %c64], %77 {strides = array<i32>} : memref<1x8x256xf32, #tpu.memory_space<vmem>>, vector<1x8x16xf32>,
    %78 = vector.extract_strided_slice %46 {offsets = [0, 90], sizes = [8, 16], strides = [1, 1]} : vector<8x288xf32> to vector<8x16xf32>
    %79 = vector.broadcast %47 : vector<8x1xf32> to vector<8x16xf32>
    %80 = arith.addf %78, %79 : vector<8x16xf32>
    %c0_32 = arith.constant 0 : index
    %c0_33 = arith.constant 0 : index
    %c80 = arith.constant 80 : index
    %81 = vector.load %arg6[%c0_32, %c0_33, %c80] : memref<1x8x256xf32, #tpu.memory_space<vmem>>, vector<1x8x16xf32>
    %82 = vector.shape_cast %81 : vector<1x8x16xf32> to vector<8x16xf32>
    %83 = vector.shape_cast %80 : vector<8x16xf32> to vector<1x8x16xf32>
    tpu.vector_store %arg6[%c0_32, %c0_33, %c80], %83 {strides = array<i32>} : memref<1x8x256xf32, #tpu.memory_space<vmem>>, vector<1x8x16xf32>,
    %84 = vector.extract_strided_slice %46 {offsets = [0, 108], sizes = [8, 16], strides = [1, 1]} : vector<8x288xf32> to vector<8x16xf32>
    %85 = vector.broadcast %47 : vector<8x1xf32> to vector<8x16xf32>
    %86 = arith.addf %84, %85 : vector<8x16xf32>
    %c0_34 = arith.constant 0 : index
    %c0_35 = arith.constant 0 : index
    %c96 = arith.constant 96 : index
    %87 = vector.load %arg6[%c0_34, %c0_35, %c96] : memref<1x8x256xf32, #tpu.memory_space<vmem>>, vector<1x8x16xf32>
    %88 = vector.shape_cast %87 : vector<1x8x16xf32> to vector<8x16xf32>
    %89 = vector.shape_cast %86 : vector<8x16xf32> to vector<1x8x16xf32>
    tpu.vector_store %arg6[%c0_34, %c0_35, %c96], %89 {strides = array<i32>} : memref<1x8x256xf32, #tpu.memory_space<vmem>>, vector<1x8x16xf32>,
    %90 = vector.extract_strided_slice %46 {offsets = [0, 126], sizes = [8, 16], strides = [1, 1]} : vector<8x288xf32> to vector<8x16xf32>
    %91 = vector.broadcast %47 : vector<8x1xf32> to vector<8x16xf32>
    %92 = arith.addf %90, %91 : vector<8x16xf32>
    %c0_36 = arith.constant 0 : index
    %c0_37 = arith.constant 0 : index
    %c112 = arith.constant 112 : index
    %93 = vector.load %arg6[%c0_36, %c0_37, %c112] : memref<1x8x256xf32, #tpu.memory_space<vmem>>, vector<1x8x16xf32>
    %94 = vector.shape_cast %93 : vector<1x8x16xf32> to vector<8x16xf32>
    %95 = vector.shape_cast %92 : vector<8x16xf32> to vector<1x8x16xf32>
    tpu.vector_store %arg6[%c0_36, %c0_37, %c112], %95 {strides = array<i32>} : memref<1x8x256xf32, #tpu.memory_space<vmem>>, vector<1x8x16xf32>,
    %96 = vector.extract_strided_slice %46 {offsets = [0, 144], sizes = [8, 16], strides = [1, 1]} : vector<8x288xf32> to vector<8x16xf32>
    %97 = vector.broadcast %47 : vector<8x1xf32> to vector<8x16xf32>
    %98 = arith.addf %96, %97 : vector<8x16xf32>
    %c0_38 = arith.constant 0 : index
    %c0_39 = arith.constant 0 : index
    %c128 = arith.constant 128 : index
    %99 = vector.load %arg6[%c0_38, %c0_39, %c128] : memref<1x8x256xf32, #tpu.memory_space<vmem>>, vector<1x8x16xf32>
    %100 = vector.shape_cast %99 : vector<1x8x16xf32> to vector<8x16xf32>
    %101 = vector.shape_cast %98 : vector<8x16xf32> to vector<1x8x16xf32>
    tpu.vector_store %arg6[%c0_38, %c0_39, %c128], %101 {strides = array<i32>} : memref<1x8x256xf32, #tpu.memory_space<vmem>>, vector<1x8x16xf32>,
    %102 = vector.extract_strided_slice %46 {offsets = [0, 162], sizes = [8, 16], strides = [1, 1]} : vector<8x288xf32> to vector<8x16xf32>
    %103 = vector.broadcast %47 : vector<8x1xf32> to vector<8x16xf32>
    %104 = arith.addf %102, %103 : vector<8x16xf32>
    %c0_40 = arith.constant 0 : index
    %c0_41 = arith.constant 0 : index
    %c144 = arith.constant 144 : index
    %105 = vector.load %arg6[%c0_40, %c0_41, %c144] : memref<1x8x256xf32, #tpu.memory_space<vmem>>, vector<1x8x16xf32>
    %106 = vector.shape_cast %105 : vector<1x8x16xf32> to vector<8x16xf32>
    %107 = vector.shape_cast %104 : vector<8x16xf32> to vector<1x8x16xf32>
    tpu.vector_store %arg6[%c0_40, %c0_41, %c144], %107 {strides = array<i32>} : memref<1x8x256xf32, #tpu.memory_space<vmem>>, vector<1x8x16xf32>,
    %108 = vector.extract_strided_slice %46 {offsets = [0, 180], sizes = [8, 16], strides = [1, 1]} : vector<8x288xf32> to vector<8x16xf32>
    %109 = vector.broadcast %47 : vector<8x1xf32> to vector<8x16xf32>
    %110 = arith.addf %108, %109 : vector<8x16xf32>
    %c0_42 = arith.constant 0 : index
    %c0_43 = arith.constant 0 : index
    %c160 = arith.constant 160 : index
    %111 = vector.load %arg6[%c0_42, %c0_43, %c160] : memref<1x8x256xf32, #tpu.memory_space<vmem>>, vector<1x8x16xf32>
    %112 = vector.shape_cast %111 : vector<1x8x16xf32> to vector<8x16xf32>
    %113 = vector.shape_cast %110 : vector<8x16xf32> to vector<1x8x16xf32>
    tpu.vector_store %arg6[%c0_42, %c0_43, %c160], %113 {strides = array<i32>} : memref<1x8x256xf32, #tpu.memory_space<vmem>>, vector<1x8x16xf32>,
    %114 = vector.extract_strided_slice %46 {offsets = [0, 198], sizes = [8, 16], strides = [1, 1]} : vector<8x288xf32> to vector<8x16xf32>
    %115 = vector.broadcast %47 : vector<8x1xf32> to vector<8x16xf32>
    %116 = arith.addf %114, %115 : vector<8x16xf32>
    %c0_44 = arith.constant 0 : index
    %c0_45 = arith.constant 0 : index
    %c176 = arith.constant 176 : index
    %117 = vector.load %arg6[%c0_44, %c0_45, %c176] : memref<1x8x256xf32, #tpu.memory_space<vmem>>, vector<1x8x16xf32>
    %118 = vector.shape_cast %117 : vector<1x8x16xf32> to vector<8x16xf32>
    %119 = vector.shape_cast %116 : vector<8x16xf32> to vector<1x8x16xf32>
    tpu.vector_store %arg6[%c0_44, %c0_45, %c176], %119 {strides = array<i32>} : memref<1x8x256xf32, #tpu.memory_space<vmem>>, vector<1x8x16xf32>,
    %120 = vector.extract_strided_slice %46 {offsets = [0, 216], sizes = [8, 16], strides = [1, 1]} : vector<8x288xf32> to vector<8x16xf32>
    %121 = vector.broadcast %47 : vector<8x1xf32> to vector<8x16xf32>
    %122 = arith.addf %120, %121 : vector<8x16xf32>
    %c0_46 = arith.constant 0 : index
    %c0_47 = arith.constant 0 : index
    %c192 = arith.constant 192 : index
    %123 = vector.load %arg6[%c0_46, %c0_47, %c192] : memref<1x8x256xf32, #tpu.memory_space<vmem>>, vector<1x8x16xf32>
    %124 = vector.shape_cast %123 : vector<1x8x16xf32> to vector<8x16xf32>
    %125 = vector.shape_cast %122 : vector<8x16xf32> to vector<1x8x16xf32>
    tpu.vector_store %arg6[%c0_46, %c0_47, %c192], %125 {strides = array<i32>} : memref<1x8x256xf32, #tpu.memory_space<vmem>>, vector<1x8x16xf32>,
    %126 = vector.extract_strided_slice %46 {offsets = [0, 234], sizes = [8, 16], strides = [1, 1]} : vector<8x288xf32> to vector<8x16xf32>
    %127 = vector.broadcast %47 : vector<8x1xf32> to vector<8x16xf32>
    %128 = arith.addf %126, %127 : vector<8x16xf32>
    %c0_48 = arith.constant 0 : index
    %c0_49 = arith.constant 0 : index
    %c208 = arith.constant 208 : index
    %129 = vector.load %arg6[%c0_48, %c0_49, %c208] : memref<1x8x256xf32, #tpu.memory_space<vmem>>, vector<1x8x16xf32>
    %130 = vector.shape_cast %129 : vector<1x8x16xf32> to vector<8x16xf32>
    %131 = vector.shape_cast %128 : vector<8x16xf32> to vector<1x8x16xf32>
    tpu.vector_store %arg6[%c0_48, %c0_49, %c208], %131 {strides = array<i32>} : memref<1x8x256xf32, #tpu.memory_space<vmem>>, vector<1x8x16xf32>,
    %132 = vector.extract_strided_slice %46 {offsets = [0, 252], sizes = [8, 16], strides = [1, 1]} : vector<8x288xf32> to vector<8x16xf32>
    %133 = vector.broadcast %47 : vector<8x1xf32> to vector<8x16xf32>
    %134 = arith.addf %132, %133 : vector<8x16xf32>
    %c0_50 = arith.constant 0 : index
    %c0_51 = arith.constant 0 : index
    %c224 = arith.constant 224 : index
    %135 = vector.load %arg6[%c0_50, %c0_51, %c224] : memref<1x8x256xf32, #tpu.memory_space<vmem>>, vector<1x8x16xf32>
    %136 = vector.shape_cast %135 : vector<1x8x16xf32> to vector<8x16xf32>
    %137 = vector.shape_cast %134 : vector<8x16xf32> to vector<1x8x16xf32>
    tpu.vector_store %arg6[%c0_50, %c0_51, %c224], %137 {strides = array<i32>} : memref<1x8x256xf32, #tpu.memory_space<vmem>>, vector<1x8x16xf32>,
    %138 = vector.extract_strided_slice %46 {offsets = [0, 270], sizes = [8, 16], strides = [1, 1]} : vector<8x288xf32> to vector<8x16xf32>
    %139 = vector.broadcast %47 : vector<8x1xf32> to vector<8x16xf32>
    %140 = arith.addf %138, %139 : vector<8x16xf32>
    %c0_52 = arith.constant 0 : index
    %c0_53 = arith.constant 0 : index
    %c240 = arith.constant 240 : index
    %141 = vector.load %arg6[%c0_52, %c0_53, %c240] : memref<1x8x256xf32, #tpu.memory_space<vmem>>, vector<1x8x16xf32>
    %142 = vector.shape_cast %141 : vector<1x8x16xf32> to vector<8x16xf32>
    %143 = vector.shape_cast %140 : vector<8x16xf32> to vector<1x8x16xf32>
    tpu.vector_store %arg6[%c0_52, %c0_53, %c240], %143 {strides = array<i32>} : memref<1x8x256xf32, #tpu.memory_space<vmem>>, vector<1x8x16xf32>,
    return
  }
  func.func @transform_0(%arg0: i32) -> (i32, i32) {
    %c0_i32 = arith.constant 0 : i32
    %c0_i32_0 = arith.constant 0 : i32
    %c0_i32_1 = arith.constant 0 : i32
    return %c0_i32, %c0_i32_0 : i32, i32
  }
  func.func @transform_1(%arg0: i32) -> (i32, i32) {
    %c0_i32 = arith.constant 0 : i32
    %c0_i32_0 = arith.constant 0 : i32
    %c0_i32_1 = arith.constant 0 : i32
    return %c0_i32, %c0_i32_0 : i32, i32
  }
  func.func @transform_2(%arg0: i32) -> (i32, i32) {
    %c0_i32 = arith.constant 0 : i32
    %c0_i32_0 = arith.constant 0 : i32
    %c0_i32_1 = arith.constant 0 : i32
    return %c0_i32, %c0_i32_0 : i32, i32
  }
  func.func @transform_3(%arg0: i32) -> (i32, i32) {
    %c0_i32 = arith.constant 0 : i32
    %c0_i32_0 = arith.constant 0 : i32
    %c0_i32_1 = arith.constant 0 : i32
    return %c0_i32, %c0_i32_0 : i32, i32
  }
  func.func @transform_4(%arg0: i32) -> (i32, i32, i32) {
    %c0_i32 = arith.constant 0 : i32
    %c0_i32_0 = arith.constant 0 : i32
    %c0_i32_1 = arith.constant 0 : i32
    return %arg0, %c0_i32, %c0_i32_0 : i32, i32, i32
  }
  func.func @transform_5(%arg0: i32) -> (i32, i32, i32) {
    %c0_i32 = arith.constant 0 : i32
    %c0_i32_0 = arith.constant 0 : i32
    %c0_i32_1 = arith.constant 0 : i32
    return %arg0, %c0_i32, %c0_i32_0 : i32, i32, i32
  }
}

</mosaic_0001>

<bundles_post_ra>
// kernel: conv_lora_forward.1
= control target key start
LH: loop header
LB: loop body
LE: loop exit
PB: predicated region body
PF: predicated region fallthrough
CT: control target
= control target key end

     0   :  { %s1627_s18 = smov 0   ;;  %s1855_s0 = inlined_call_operand.vmem [shape: f32[8,36], index: 0, kind: input, shape index: {}]   ;;  %s1856_s1 = inlined_call_operand.vmem [shape: bf16[8,18], index: 1, kind: input, shape index: {}]   ;;  %s1857_s2 = inlined_call_operand.vmem [shape: bf16[18,36], index: 2, kind: input, shape index: {}]   ;;  %s1858_s3 = inlined_call_operand.vmem [shape: f32[8,1], index: 3, kind: input, shape index: {}]   ;;  %s1859_s4 = inlined_call_operand.vmem [shape: bf16[2,4,360], index: 4, kind: input, shape index: {}]   ;;  %s1860_s5 = inlined_call_operand.vmem [shape: f32[2,8,256], index: 5, kind: output, shape index: {}]  }
   0x1 LB: > { %s1402_s19 = sadd.s32 4294967295, %s1570_s18   ;;  %p1406_p0 = scmp.ge.s32.totalorder %s1570_s18, 1  ;;  %s1570_s18 = sphi %s1627_s18, %s15_s18  }
   0x2   : > { %p187_p1 = scmp.lt.s32.totalorder %s1570_s18, 3 }
   0x4   : > { %p188_p2 = pnand %p1406_p0, %p187_p1 }
   0x5   : > { %v1561_v0 = vld [vmem:[%s1857_s2] sm:$0xff] (!%p188_p2)   ;;  %v300_v1 = vlaneseq (!%p188_p2)  ;;  %v1572_v2 = vmov (!%p188_p2), 0.0   ;;  %v1562_v3 = vld [vmem:[%s1857_s2 + $0x8] ss:$0 sps:$4 sm:$0x11] (!%p188_p2)   ;;  %vm243_vm0 = vcmask (!%p188_p2), 1040384  }
   0x6   : > { %191 = sbr.rel (%p188_p2) target bundleno = 769 (0x301), region = 40  ;;  %1464 = vmatprep.subr.bf16.mxu0 (!%p188_p2), %v1572_v2  ;;  %p215_p3 = scmp.lt.s32.totalorder (!%p188_p2), %s1402_s19, 1  ;;  %v245_v4 = vsel (!%p188_p2), %vm243_vm0, %v1562_v3, 0  ;;  %vm1573_vm1 = vmmov (!%p188_p2), 0   ;;  %v1574_v5 = vmov (!%p188_p2), 1983009808  }
   0x7   : > { %1465 = vmatpush3.bf16.msra.mxu0 (!%p188_p2), %v1561_v0  ;;  %1468 = vmatprep.mubr.msk.bf16.mxu0 (!%p188_p2), %vm1573_vm1, %v1572_v2  ;;  %v298_v6 = vunpack.c.l.s4 (!%p188_p2), %v1574_v5  ;;  %v301_v7 = vshrl.u32 (!%p188_p2), %v300_v1, 7  ;;  %v226_v8 = vld [vmem:[%s1856_s1] sm:$0xf] (!%p188_p2)  ;;  %vm239_vm2 = vcmask (!%p188_p2), 146432   ;;  %s1575_s30 = smov (!%p188_p2), 127   ;;  %vm325_vm3 = vcmask (!%p188_p2), 1041408  }
   0x8   : > { %1466 = vmatprep.subr.bf16.mxu0 (!%p188_p2), %v1572_v2  ;;  %v1576_v17 = vmov (!%p188_p2), 0   ;;  %s1577_s6 = smov (!%p188_p2), 126   ;;  %s1578_s7 = smov (!%p188_p2), 110   ;;  %vm318_vm4 = vcmask (!%p188_p2), 1039360   ;;  %v287_v25 = vld [vmem:[%s1855_s0] sm:$0xff] (!%p188_p2)  ;;  %vm321_vm5 = vcmask (!%p188_p2), 31744  }
   0x9   : > { %v299_v9 = vunpack.c.0.s8 (!%p188_p2), %v298_v6  ;;  %367 = vmatprep.mubr.bf16.mxu1 (!%p188_p2), %v1576_v17  ;;  %1560 = vset.pattern.permute.xlu0 (!%p188_p2), %v1576_v17  ;;  %s1579_s8 = smov (!%p188_p2), 109   ;;  %s1580_s9 = smov (!%p188_p2), 108   ;;  %v1258_v33 = vld [vmem:[%s1858_s3] sm:$0xff] (!%p188_p2)  ;;  %vm517_vm6 = vcmask (!%p188_p2), 1031168   ;;  %vm624_vm7 = vcmask (!%p188_p2), 900096   ;;  %vm731_vm8 = vcmask (!%p188_p2), 891904  }
   0xa   : > { %s1581_s10 = smov (!%p188_p2), 92   ;;  %s1582_s11 = smov (!%p188_p2), 91   ;;  %vm838_vm9 = vcmask (!%p188_p2), 883712   ;;  %vm945_vm10 = vcmask (!%p188_p2), 752640   ;;  %vm1052_vm11 = vcmask (!%p188_p2), 744448   ;;  %vm1159_vm12 = vcmask (!%p188_p2), 736256  }
   0xb   : > { %1467 = vmatpush3.bf16.msra.mxu0 (!%p188_p2), %v245_v4  ;;  %v302_v10 = vsub.s32 (!%p188_p2), %v299_v9, %v301_v7  ;;  %s1583_s12 = smov (!%p188_p2), 90   ;;  %s1584_s15 = smov (!%p188_p2), 124   ;;  %vm1265_vm13 = vcmask (!%p188_p2), 130048   ;;  %vm1271_vm14 = vcmask (!%p188_p2), 261248   ;;  %vm1276_vm15 = vcmask (!%p188_p2), 392448  }
   0xc   : > { %s1585_s16 = smov (!%p188_p2), 120   ;;  %s1586_s17 = smov (!%p188_p2), 116   ;;  %vm1281_vm0 = vcmask (!%p188_p2), 523648  }
   0xd   : > { %s1862_s19 = smov (!%p215_p3, %s1402_s19), 1  ;;  %s1587_s20 = smov 112  }
   0xe   : > { %s1526_s26 = smul.u32 6, %s1862_s19  ;;  %1469 = vmatmul.mubr.msk.bf16.vlgmr.msra.gmra.mrb[0].mxu0 %vm239_vm2, %v226_v8  ;;  %s1588_s21 = smov 104   ;;  %vm1291_vm2 = vcmask 786048  }
   0xf   : > { %460 = vmatprep.mubr.bf16.mxu0 %v1576_v17  ;;  %s1589_s22 = smov 100   ;;  %s1590_s23 = smov 96  }
  0x10   : > { %s219_s29 = scalar_lea.vmem %s1859_s4, %s1526_s26  ;;  %s1442_s26 = sshll.u32 %s1862_s19, 4 }
  0x11   : > { %v291_v11 = vld [vmem:[%s219_s29] sm:$0x3f]  ;;  %s1808_s29 = scalar_lea.vmem %s1860_s5, %s1442_s26  ;;  %s1591_s19 = smov 114  }
  0x12   : > { %v303_v12 = vrot.slane %v291_v11, %v302_v10  ;;  %v296_v13 = vcombine.high %v291_v11, %v291_v11 }
  0x14   : > { %312 = vrot.lane.b32.xlu0 %v303_v12, %s1575_s30  ;;  %v1654_v14 = vcombine.high %v303_v12, %v303_v12  ;;  %v1656_v15 = vrot.slane %v296_v13, %v302_v10  ;;  %v420_v16 = vsel %vm325_vm3, %v303_v12, 0 }
  0x16   : > { %316 = vrot.lane.b32.xlu1 %v1656_v15, %s1575_s30  ;;  %1416 = vmatprep.subr.msk.bf16.mxu0 %vm325_vm3, %v1654_v14  ;;  %v426_v45 = vsel %vm325_vm3, %v1656_v15, 0 }
  0x17   : > { %429 = vmatpush1.bf16.msra.mxu0 %v420_v16 }
  0x18   : > { %314 = vrot.lane.b32.xlu0 %v1654_v14, %s1575_s30  ;;  %s1592_s30 = smov 122  }
  0x1c   : > { %511 = vrot.lane.b32.xlu0 %v303_v12, %s1577_s6 }
  0x20   : > { %515 = vrot.lane.b32.xlu0 %v1656_v15, %s1577_s6 }
  0x24   : > { %618 = vrot.lane.b32.xlu0 %v303_v12, %s1578_s7 }
  0x28   : > { %622 = vrot.lane.b32.xlu0 %v1656_v15, %s1578_s7 }
  0x2c   : > { %725 = vrot.lane.b32.xlu0 %v303_v12, %s1579_s8 }
  0x30   : > { %729 = vrot.lane.b32.xlu0 %v1656_v15, %s1579_s8 }
  0x34   : > { %832 = vrot.lane.b32.xlu0 %v303_v12, %s1580_s9 }
  0x38   : > { %836 = vrot.lane.b32.xlu0 %v1656_v15, %s1580_s9 }
  0x3c   : > { %939 = vrot.lane.b32.xlu0 %v303_v12, %s1581_s10 }
  0x40   : > { %943 = vrot.lane.b32.xlu0 %v1656_v15, %s1581_s10 }
  0x44   : > { %1046 = vrot.lane.b32.xlu0 %v303_v12, %s1582_s11 }
  0x48   : > { %1050 = vrot.lane.b32.xlu0 %v1656_v15, %s1582_s11 }
  0x4c   : > { %1153 = vrot.lane.b32.xlu0 %v303_v12, %s1583_s12 }
  0x50   : > { %1157 = vrot.lane.b32.xlu0 %v1656_v15, %s1583_s12 }
  0x54   : > { %1261 = vperm.xlu0 %1560, %v1258_v33  }
  0x86   : > { %v313_v18 = vpop.permute.xlu0 %312 }
  0x88   : > { %v317_v19 = vpop.permute.xlu1 %316 }
  0x89   : > { %v333_v39 = vsel %vm325_vm3, %v317_v19, 0 }
  0x8a   : > { %v315_v20 = vpop.permute.xlu0 %314 }
  0x8b   : > { %v320_v21 = vsel %vm318_vm4, %v315_v20, %v317_v19  ;;  %v319_v22 = vsel %vm318_vm4, %v313_v18, %v315_v20  ;;  %vm1339_vm4 = vcmask 818176  }
  0x8c   : > { %1413 = vmatprep.subr.msk.bf16.mxu1 %vm325_vm3, %v320_v21  ;;  %v327_v23 = vsel %vm325_vm3, %v319_v22, 0 }
  0x8d   : > { %336 = vmatpush1.bf16.msra.mxu1 %v327_v23 }
  0x8e   : > { %1472 = vmatprep.subr.bf16.mxu1 %v1572_v2  ;;  %v512_v32 = vpop.permute.xlu0 %511 }
  0x92   : > { %v516_v34 = vpop.permute.xlu0 %515 }
  0x93   : > { %v530_v54 = vsel %vm325_vm3, %v516_v34, 0 }
  0x96   : > { %v619_v35 = vpop.permute.xlu0 %618 }
  0x9a   : > { %v623_v36 = vpop.permute.xlu0 %622 }
  0x9b   : > { %v637_v61 = vsel %vm325_vm3, %v623_v36, 0 }
  0x9e   : > { %v726_v37 = vpop.permute.xlu0 %725 }
  0xa2   : > { %v730_v40 = vpop.permute.xlu0 %729 }
  0xa3   : > { %v744_v6 = vsel %vm325_vm3, %v730_v40, 0 }
  0xa6   : > { %v833_v47 = vpop.permute.xlu0 %832 }
  0xaa   : > { %v837_v52 = vpop.permute.xlu0 %836 }
  0xab   : > { %v851_v13 = vsel %vm325_vm3, %v837_v52, 0 }
  0xae   : > { %v940_v56 = vpop.permute.xlu0 %939 }
  0xb2   : > { %v944_v62 = vpop.permute.xlu0 %943 }
  0xb3   : > { %v958_v21 = vsel %vm325_vm3, %v944_v62, 0 }
  0xb6   : > { %v1047_v5 = vpop.permute.xlu0 %1046 }
  0xba   : > { %v1051_v11 = vpop.permute.xlu0 %1050 }
  0xbe   : > { %v1154_v15 = vpop.permute.xlu0 %1153 }
  0xc2   : > { %v1158_v22 = vpop.permute.xlu0 %1157 }
  0xe1   : > { %v281_v24 = vpop.f32.mrb[0].mxu0 }
  0xe2   : > { %v288_v26 = vmul.f32 2.0, %v281_v24  ;;  %v1470_v27 = vpop.f32.mrb[1].mxu0 }
  0xe3   : > { %v284_v28 = vpop.f32.mrb[2].mxu0 }
  0xe4   : > { %v289_v29 = vadd.f32 %v288_v26, %v287_v25  ;;  %v1471_v30 = vpop.f32.mrb[3].mxu0  ;;  %v1065_v28 = vsel %vm325_vm3, %v1051_v11, 0 }
  0xe6   : > { %v1693_v31 = vpack.c.bf16 %v289_v29, %v289_v29 }
  0xe8   : > { %1417 = vmatmul.mubr.msk.bf16.vlgmr.msra.gmra.mrb[4].mxu0 %vm321_vm5, %v1693_v31  ;;  %293 = vrot.lane.b32.xlu1 %v1693_v31, %s1584_s15 }
  0xe9   : > { %564 = vmatprep.mubr.bf16.mxu0 %v1576_v17 }
  0xec   : > { %513 = vrot.lane.b32.xlu1 %v1654_v14, %s1577_s6 }
  0xf0   : > { %509 = vrot.lane.b32.xlu1 %v1693_v31, %s1585_s16 }
  0xf4   : > { %620 = vrot.lane.b32.xlu1 %v1654_v14, %s1578_s7 }
  0xf8   : > { %616 = vrot.lane.b32.xlu1 %v1693_v31, %s1586_s17 }
  0xfc   : > { %727 = vrot.lane.b32.xlu1 %v1654_v14, %s1579_s8  ;;  %s1594_s8 = smov 118  }
 0x100   : > { %723 = vrot.lane.b32.xlu1 %v1693_v31, %s1587_s20 }
 0x104   : > { %834 = vrot.lane.b32.xlu1 %v1654_v14, %s1580_s9 }
 0x108   : > { %830 = vrot.lane.b32.xlu1 %v1693_v31, %s1580_s9 }
 0x10c   : > { %941 = vrot.lane.b32.xlu1 %v1654_v14, %s1581_s10 }
 0x110   : > { %937 = vrot.lane.b32.xlu1 %v1693_v31, %s1588_s21 }
 0x114   : > { %1048 = vrot.lane.b32.xlu1 %v1654_v14, %s1582_s11 }
 0x118   : > { %1044 = vrot.lane.b32.xlu1 %v1693_v31, %s1589_s22 }
 0x11c   : > { %1155 = vrot.lane.b32.xlu1 %v1654_v14, %s1583_s12 }
 0x120   : > { %1151 = vrot.lane.b32.xlu1 %v1693_v31, %s1590_s23 }
 0x15a   : > { %v294_v38 = vpop.permute.xlu1 %293 }
 0x15b   : > { %1414 = vmatmul.mubr.msk.bf16.vlgmr.msra.gmra.mrb[0].mxu1 %vm321_vm5, %v294_v38 }
 0x15c   : > { %1473 = vmatpush3.bf16.msra.mxu1 %v333_v39  ;;  %1474 = vmatprep.mubr.msk.bf16.mxu1 %vm1573_vm1, %v1572_v2 }
 0x15d   : > { %1478 = vmatprep.subr.bf16.mxu1 %v1572_v2 }
 0x15e   : > { %v514_v41 = vpop.permute.xlu1 %513 }
 0x15f   : > { %v518_v42 = vsel %vm517_vm6, %v512_v32, %v514_v41  ;;  %v519_v43 = vsel %vm517_vm6, %v514_v41, %v516_v34  ;;  %vm1304_vm6 = vcmask 932864  }
 0x160   : > { %v524_v44 = vsel %vm325_vm3, %v518_v42, 0  ;;  %1419 = vmatprep.subr.msk.bf16.mxu0 %vm325_vm3, %v519_v43 }
 0x161   : > { %533 = vmatpush1.bf16.msra.mxu0 %v524_v44 }
 0x162   : > { %v510_v46 = vpop.permute.xlu1 %509 }
 0x163   : > { %1475 = vmatmul.mubr.msk.bf16.vlgmr.msra.gmra.mrb[4].mxu1 %vm321_vm5, %v294_v38 }
 0x164   : > { %1420 = vmatmul.mubr.msk.bf16.vlgmr.msra.gmra.mrb[8].mxu0 %vm321_vm5, %v510_v46  ;;  %1479 = vmatpush3.bf16.msra.mxu1 %v426_v45 }
 0x165   : > { %1480 = vmatprep.mubr.msk.bf16.mxu1 %vm1573_vm1, %v1572_v2  ;;  %1484 = vmatprep.subr.bf16.mxu1 %v1572_v2 }
 0x166   : > { %v621_v48 = vpop.permute.xlu1 %620  ;;  %671 = vmatprep.mubr.bf16.mxu0 %v1576_v17 }
 0x167   : > { %v625_v49 = vsel %vm624_vm7, %v619_v35, %v621_v48  ;;  %v626_v50 = vsel %vm624_vm7, %v621_v48, %v623_v36 }
 0x168   : > { %v631_v51 = vsel %vm325_vm3, %v625_v49, 0  ;;  %1422 = vmatprep.subr.msk.bf16.mxu0 %vm325_vm3, %v626_v50 }
 0x169   : > { %640 = vmatpush1.bf16.msra.mxu0 %v631_v51 }
 0x16a   : > { %v617_v53 = vpop.permute.xlu1 %616 }
 0x16b   : > { %1481 = vmatmul.mubr.msk.bf16.vlgmr.msra.gmra.mrb[8].mxu1 %vm321_vm5, %v1693_v31 }
 0x16c   : > { %1485 = vmatpush3.bf16.msra.mxu1 %v530_v54  ;;  %1423 = vmatmul.mubr.msk.bf16.vlgmr.msra.gmra.mrb[12].mxu0 %vm321_vm5, %v617_v53 }
 0x16d   : > { %1486 = vmatprep.mubr.msk.bf16.mxu1 %vm1573_vm1, %v1572_v2  ;;  %1490 = vmatprep.subr.bf16.mxu1 %v1572_v2 }
 0x16e   : > { %v728_v55 = vpop.permute.xlu1 %727  ;;  %778 = vmatprep.mubr.bf16.mxu0 %v1576_v17 }
 0x16f   : > { %v732_v57 = vsel %vm731_vm8, %v726_v37, %v728_v55  ;;  %v733_v58 = vsel %vm731_vm8, %v728_v55, %v730_v40 }
 0x170   : > { %v738_v59 = vsel %vm325_vm3, %v732_v57, 0  ;;  %1425 = vmatprep.subr.msk.bf16.mxu0 %vm325_vm3, %v733_v58 }
 0x171   : > { %747 = vmatpush1.bf16.msra.mxu0 %v738_v59 }
 0x172   : > { %v724_v60 = vpop.permute.xlu1 %723 }
 0x173   : > { %1487 = vmatmul.mubr.msk.bf16.vlgmr.msra.gmra.mrb[12].mxu1 %vm321_vm5, %v510_v46 }
 0x174   : > { %1491 = vmatpush3.bf16.msra.mxu1 %v637_v61  ;;  %1426 = vmatmul.mubr.msk.bf16.vlgmr.msra.gmra.mrb[16].mxu0 %vm321_vm5, %v724_v60 }
 0x175   : > { %1492 = vmatprep.mubr.msk.bf16.mxu1 %vm1573_vm1, %v1572_v2  ;;  %1496 = vmatprep.subr.bf16.mxu1 %v1572_v2 }
 0x176   : > { %v835_v63 = vpop.permute.xlu1 %834  ;;  %885 = vmatprep.mubr.bf16.mxu0 %v1576_v17 }
 0x177   : > { %v839_v0 = vsel %vm838_vm9, %v833_v47, %v835_v63  ;;  %v840_v1 = vsel %vm838_vm9, %v835_v63, %v837_v52 }
 0x178   : > { %v845_v3 = vsel %vm325_vm3, %v839_v0, 0  ;;  %1428 = vmatprep.subr.msk.bf16.mxu0 %vm325_vm3, %v840_v1 }
 0x179   : > { %854 = vmatpush1.bf16.msra.mxu0 %v845_v3 }
 0x17a   : > { %v831_v4 = vpop.permute.xlu1 %830 }
 0x17b   : > { %1493 = vmatmul.mubr.msk.bf16.vlgmr.msra.gmra.mrb[16].mxu1 %vm321_vm5, %v617_v53 }
 0x17c   : > { %1497 = vmatpush3.bf16.msra.mxu1 %v744_v6  ;;  %1429 = vmatmul.mubr.msk.bf16.vlgmr.msra.gmra.mrb[20].mxu0 %vm321_vm5, %v831_v4 }
 0x17d   : > { %1498 = vmatprep.mubr.msk.bf16.mxu1 %vm1573_vm1, %v1572_v2  ;;  %1502 = vmatprep.subr.bf16.mxu1 %v1572_v2 }
 0x17e   : > { %v942_v7 = vpop.permute.xlu1 %941  ;;  %992 = vmatprep.mubr.bf16.mxu0 %v1576_v17 }
 0x17f   : > { %v946_v8 = vsel %vm945_vm10, %v940_v56, %v942_v7  ;;  %v947_v9 = vsel %vm945_vm10, %v942_v7, %v944_v62 }
 0x180   : > { %v952_v10 = vsel %vm325_vm3, %v946_v8, 0  ;;  %1431 = vmatprep.subr.msk.bf16.mxu0 %vm325_vm3, %v947_v9 }
 0x181   : > { %961 = vmatpush1.bf16.msra.mxu0 %v952_v10 }
 0x182   : > { %v938_v12 = vpop.permute.xlu1 %937 }
 0x183   : > { %1499 = vmatmul.mubr.msk.bf16.vlgmr.msra.gmra.mrb[20].mxu1 %vm321_vm5, %v724_v60 }
 0x184   : > { %1503 = vmatpush3.bf16.msra.mxu1 %v851_v13  ;;  %1432 = vmatmul.mubr.msk.bf16.vlgmr.msra.gmra.mrb[24].mxu0 %vm321_vm5, %v938_v12 }
 0x185   : > { %1504 = vmatprep.mubr.msk.bf16.mxu1 %vm1573_vm1, %v1572_v2  ;;  %1508 = vmatprep.subr.bf16.mxu1 %v1572_v2 }
 0x186   : > { %v1049_v14 = vpop.permute.xlu1 %1048  ;;  %1099 = vmatprep.mubr.bf16.mxu0 %v1576_v17 }
 0x187   : > { %v1053_v16 = vsel %vm1052_vm11, %v1047_v5, %v1049_v14  ;;  %v1054_v18 = vsel %vm1052_vm11, %v1049_v14, %v1051_v11 }
 0x188   : > { %v1059_v19 = vsel %vm325_vm3, %v1053_v16, 0  ;;  %1434 = vmatprep.subr.msk.bf16.mxu0 %vm325_vm3, %v1054_v18 }
 0x189   : > { %1068 = vmatpush1.bf16.msra.mxu0 %v1059_v19 }
 0x18a   : > { %v1045_v20 = vpop.permute.xlu1 %1044 }
 0x18b   : > { %1505 = vmatmul.mubr.msk.bf16.vlgmr.msra.gmra.mrb[24].mxu1 %vm321_vm5, %v831_v4 }
 0x18c   : > { %1509 = vmatpush3.bf16.msra.mxu1 %v958_v21  ;;  %1435 = vmatmul.mubr.msk.bf16.vlgmr.msra.gmra.mrb[28].mxu0 %vm321_vm5, %v1045_v20 }
 0x18d   : > { %1510 = vmatprep.mubr.msk.bf16.mxu1 %vm1573_vm1, %v1572_v2  ;;  %1514 = vmatprep.subr.bf16.mxu1 %v1572_v2 }
 0x18e   : > { %v1156_v23 = vpop.permute.xlu1 %1155  ;;  %1206 = vmatprep.mubr.bf16.mxu0 %v1576_v17  ;;  %v1172_v17 = vsel %vm325_vm3, %v1158_v22, 0 }
 0x18f   : > { %v1160_v24 = vsel %vm1159_vm12, %v1154_v15, %v1156_v23  ;;  %v1161_v25 = vsel %vm1159_vm12, %v1156_v23, %v1158_v22 }
 0x190   : > { %v1166_v26 = vsel %vm325_vm3, %v1160_v24, 0  ;;  %1437 = vmatprep.subr.msk.bf16.mxu0 %vm325_vm3, %v1161_v25  ;;  %vm1296_vm3 = vcmask 917248  }
 0x191   : > { %1175 = vmatpush1.bf16.msra.mxu0 %v1166_v26 }
 0x192   : > { %v1152_v27 = vpop.permute.xlu1 %1151 }
 0x193   : > { %1511 = vmatmul.mubr.msk.bf16.vlgmr.msra.gmra.mrb[28].mxu1 %vm321_vm5, %v938_v12 }
 0x194   : > { %1515 = vmatpush3.bf16.msra.mxu1 %v1065_v28  ;;  %1438 = vmatmul.mubr.msk.bf16.vlgmr.msra.gmra.mrb[32].mxu0 %vm321_vm5, %v1152_v27 }
 0x195   : > { %1516 = vmatprep.mubr.msk.bf16.mxu1 %vm1573_vm1, %v1572_v2  ;;  %1520 = vmatprep.subr.bf16.mxu1 %v1572_v2 }
 0x19b   : > { %1517 = vmatmul.mubr.msk.bf16.vlgmr.msra.gmra.mrb[32].mxu1 %vm321_vm5, %v1045_v20 }
 0x19c   : > { %1521 = vmatpush3.bf16.msra.mxu1 %v1172_v17  ;;  %1522 = vmatprep.mubr.msk.bf16.mxu1 %vm1573_vm1, %v1572_v2  ;;  %vm1286_vm1 = vcmask 654848  }
 0x1a3   : > { %1523 = vmatmul.mubr.msk.bf16.vlgmr.msra.gmra.mrb[36].mxu1 %vm321_vm5, %v1152_v27  ;;  %vm1307_vm5 = vcmask 1048448  }
 0x1bb   : > { %v462_v29 = vpop.f32.mrb[4].mxu0 }
 0x1bc   : > { %v464_v30 = vpop.f32.mrb[5].mxu0 }
 0x1bd   : > { %v466_v31 = vpop.f32.mrb[6].mxu0 }
 0x1be   : > { %v467_v32 = vpop.f32.mrb[7].mxu0 }
 0x22e   : > { %v369_v33 = vpop.f32.mrb[0].mxu1 }
 0x22f   : > { %v463_v34 = vadd.f32 %v462_v29, %v369_v33  ;;  %v371_v35 = vpop.f32.mrb[1].mxu1 }
 0x230   : > { %v465_v36 = vadd.f32 %v464_v30, %v371_v35  ;;  %v373_v37 = vpop.f32.mrb[2].mxu1 }
 0x231   : > { %v374_v38 = vpop.f32.mrb[3].mxu1 }
 0x236   : > { %v410_v39 = vpop.f32.mrb[4].mxu1 }
 0x237   : > { %v1476_v40 = vpop.f32.mrb[5].mxu1  ;;  %v566_v41 = vpop.f32.mrb[8].mxu0 }
 0x238   : > { %v613_v42 = vadd.f32 %v566_v41, %v463_v34  ;;  %v413_v43 = vpop.f32.mrb[6].mxu1  ;;  %v568_v44 = vpop.f32.mrb[9].mxu0 }
 0x239   : > { %v614_v45 = vadd.f32 %v568_v44, %v465_v36  ;;  %v1477_v2 = vpop.f32.mrb[7].mxu1  ;;  %v570_v46 = vpop.f32.mrb[10].mxu0 }
 0x23a   : > { %v571_v47 = vpop.f32.mrb[11].mxu0  ;;  %v1262_v41 = vpop.permute.xlu0 %1261 }
 0x23e   : > { %v503_v48 = vpop.f32.mrb[8].mxu1 }
 0x23f   : > { %v504_v49 = vadd.f32 %v503_v48, %v410_v39  ;;  %v1482_v50 = vpop.f32.mrb[9].mxu1  ;;  %v673_v51 = vpop.f32.mrb[12].mxu0 }
 0x240   : > { %v720_v52 = vadd.f32 %v673_v51, %v613_v42  ;;  %v506_v53 = vpop.f32.mrb[10].mxu1  ;;  %v675_v54 = vpop.f32.mrb[13].mxu0 }
 0x241   : > { %v721_v55 = vadd.f32 %v675_v54, %v614_v45  ;;  %v1483_v56 = vpop.f32.mrb[11].mxu1  ;;  %v677_v57 = vpop.f32.mrb[14].mxu0 }
 0x242   : > { %v678_v58 = vpop.f32.mrb[15].mxu0 }
 0x246   : > { %v607_v59 = vpop.f32.mrb[12].mxu1 }
 0x247   : > { %v615_v60 = vadd.f32 %v607_v59, %v504_v49  ;;  %v1488_v61 = vpop.f32.mrb[13].mxu1  ;;  %v780_v62 = vpop.f32.mrb[16].mxu0 }
 0x248   : > { %v827_v63 = vadd.f32 %v780_v62, %v720_v52  ;;  %v610_v0 = vpop.f32.mrb[14].mxu1  ;;  %v782_v1 = vpop.f32.mrb[17].mxu0 }
 0x249   : > { %v828_v3 = vadd.f32 %v782_v1, %v721_v55  ;;  %v1489_v4 = vpop.f32.mrb[15].mxu1  ;;  %v784_v5 = vpop.f32.mrb[18].mxu0 }
 0x24a   : > { %v785_v6 = vpop.f32.mrb[19].mxu0 }
 0x24e   : > { %v714_v7 = vpop.f32.mrb[16].mxu1 }
 0x24f   : > { %v722_v8 = vadd.f32 %v714_v7, %v615_v60  ;;  %v1494_v9 = vpop.f32.mrb[17].mxu1  ;;  %v887_v10 = vpop.f32.mrb[20].mxu0 }
 0x250   : > { %v934_v11 = vadd.f32 %v887_v10, %v827_v63  ;;  %v717_v12 = vpop.f32.mrb[18].mxu1  ;;  %v889_v13 = vpop.f32.mrb[21].mxu0 }
 0x251   : > { %v935_v14 = vadd.f32 %v889_v13, %v828_v3  ;;  %v1495_v15 = vpop.f32.mrb[19].mxu1  ;;  %v891_v16 = vpop.f32.mrb[22].mxu0 }
 0x252   : > { %v892_v18 = vpop.f32.mrb[23].mxu0 }
 0x256   : > { %v821_v19 = vpop.f32.mrb[20].mxu1 }
 0x257   : > { %v829_v20 = vadd.f32 %v821_v19, %v722_v8  ;;  %v1500_v21 = vpop.f32.mrb[21].mxu1  ;;  %v994_v22 = vpop.f32.mrb[24].mxu0 }
 0x258   : > { %v1041_v23 = vadd.f32 %v994_v22, %v934_v11  ;;  %v824_v24 = vpop.f32.mrb[22].mxu1  ;;  %v996_v25 = vpop.f32.mrb[25].mxu0 }
 0x259   : > { %v1042_v26 = vadd.f32 %v996_v25, %v935_v14  ;;  %v1501_v27 = vpop.f32.mrb[23].mxu1  ;;  %v998_v28 = vpop.f32.mrb[26].mxu0 }
 0x25a   : > { %v999_v17 = vpop.f32.mrb[27].mxu0 }
 0x25e   : > { %v928_v29 = vpop.f32.mrb[24].mxu1 }
 0x25f   : > { %v936_v30 = vadd.f32 %v928_v29, %v829_v20  ;;  %v1506_v31 = vpop.f32.mrb[25].mxu1  ;;  %v1101_v32 = vpop.f32.mrb[28].mxu0 }
 0x260   : > { %v1148_v33 = vadd.f32 %v1101_v32, %v1041_v23  ;;  %v931_v34 = vpop.f32.mrb[26].mxu1  ;;  %v1103_v35 = vpop.f32.mrb[29].mxu0 }
 0x261   : > { %v1149_v36 = vadd.f32 %v1103_v35, %v1042_v26  ;;  %v1507_v37 = vpop.f32.mrb[27].mxu1  ;;  %v1105_v38 = vpop.f32.mrb[30].mxu0 }
 0x262   : > { %v1106_v39 = vpop.f32.mrb[31].mxu0 }
 0x266   : > { %v1035_v40 = vpop.f32.mrb[28].mxu1 }
 0x267   : > { %v1043_v42 = vadd.f32 %v1035_v40, %v936_v30  ;;  %v1512_v43 = vpop.f32.mrb[29].mxu1  ;;  %v1208_v44 = vpop.f32.mrb[32].mxu0 }
 0x268   : > { %v1255_v45 = vadd.f32 %v1208_v44, %v1148_v33  ;;  %v1038_v2 = vpop.f32.mrb[30].mxu1  ;;  %v1210_v46 = vpop.f32.mrb[33].mxu0 }
 0x269   : > { %v1256_v47 = vadd.f32 %v1210_v46, %v1149_v36  ;;  %v1513_v48 = vpop.f32.mrb[31].mxu1  ;;  %v1212_v49 = vpop.f32.mrb[34].mxu0 }
 0x26a   : > { %v1264_v50 = vadd.f32 %v1262_v41, %v1255_v45  ;;  %v1213_v51 = vpop.f32.mrb[35].mxu0 }
 0x26b   : > { %v1298_v52 = vadd.f32 %v1262_v41, %v1256_v47 }
 0x26c   : > { %1300 = vrot.lane.b32.xlu0 %v1264_v50, %s1591_s19  ;;  %1268 = vrot.lane.b32.xlu1 %v1264_v50, %s1577_s6  ;;  %1266 = vst.msk [vmem:[%s1808_s29] sm:$0xff] %vm1265_vm13, %v1264_v50  ;;  %s1593_s6 = smov 106  }
 0x26e   : > { %v1142_v53 = vpop.f32.mrb[32].mxu1 }
 0x26f   : > { %v1150_v54 = vadd.f32 %v1142_v53, %v1043_v42  ;;  %v1518_v55 = vpop.f32.mrb[33].mxu1 }
 0x270   : > { %1273 = vrot.lane.b32.xlu1 %v1264_v50, %s1584_s15  ;;  %1313 = vrot.lane.b32.xlu0 %v1298_v52, %s1578_s7  ;;  %v1145_v56 = vpop.f32.mrb[34].mxu1  ;;  %s1595_s7 = smov 102  }
 0x271   : > { %v1519_v57 = vpop.f32.mrb[35].mxu1 }
 0x274   : > { %1278 = vrot.lane.b32.xlu1 %v1264_v50, %s1592_s30  ;;  %1317 = vrot.lane.b32.xlu0 %v1298_v52, %s1580_s9  ;;  %s1596_s9 = smov 98  }
 0x276   : > { %v1249_v58 = vpop.f32.mrb[36].mxu1 }
 0x277   : > { %v1257_v59 = vadd.f32 %v1249_v58, %v1150_v54  ;;  %v1524_v60 = vpop.f32.mrb[37].mxu1 }
 0x278   : > { %1283 = vrot.lane.b32.xlu1 %v1264_v50, %s1585_s16  ;;  %1321 = vrot.lane.b32.xlu0 %v1298_v52, %s1593_s6  ;;  %v1252_v61 = vpop.f32.mrb[38].mxu1 }
 0x279   : > { %v1525_v62 = vpop.f32.mrb[39].mxu1  ;;  %v1333_v63 = vadd.f32 %v1262_v41, %v1257_v59 }
 0x27c   : > { %1288 = vrot.lane.b32.xlu1 %v1264_v50, %s1594_s8  ;;  %1325 = vrot.lane.b32.xlu0 %v1298_v52, %s1588_s21 }
 0x280   : > { %1293 = vrot.lane.b32.xlu1 %v1264_v50, %s1586_s17  ;;  %1329 = vrot.lane.b32.xlu0 %v1298_v52, %s1595_s7 }
 0x284   : > { %1309 = vrot.lane.b32.xlu1 %v1298_v52, %s1587_s20  ;;  %1337 = vrot.lane.b32.xlu0 %v1333_v63, %s1589_s22 }
 0x288   : > { %1335 = vrot.lane.b32.xlu1 %v1298_v52, %s1589_s22  ;;  %1343 = vrot.lane.b32.xlu0 %v1333_v63, %s1596_s9 }
 0x28c   : > { %1302 = vrot.lane.b32.xlu1 %v1298_v52, %s1591_s19 }
 0x2de   : > { %v1301_v0 = vpop.permute.xlu0 %1300  ;;  %v1269_v1 = vpop.permute.xlu1 %1268 }
 0x2df   : > { %1272 = vst.msk [vmem:[%s1808_s29] sm:$0xff] %vm1271_vm14, %v1269_v1 }
 0x2e2   : > { %v1274_v3 = vpop.permute.xlu1 %1273  ;;  %v1314_v4 = vpop.permute.xlu0 %1313 }
 0x2e3   : > { %1277 = vst.msk [vmem:[%s1808_s29] sm:$0xff] %vm1276_vm15, %v1274_v3 }
 0x2e6   : > { %v1279_v5 = vpop.permute.xlu1 %1278  ;;  %v1318_v6 = vpop.permute.xlu0 %1317 }
 0x2e7   : > { %1282 = vst.msk [vmem:[%s1808_s29] sm:$0xff] %vm1281_vm0, %v1279_v5 }
 0x2ea   : > { %v1284_v7 = vpop.permute.xlu1 %1283  ;;  %v1322_v8 = vpop.permute.xlu0 %1321 }
 0x2eb   : > { %1287 = vst.msk [vmem:[%s1808_s29] sm:$0xff] %vm1286_vm1, %v1284_v7 }
 0x2ee   : > { %v1289_v9 = vpop.permute.xlu1 %1288  ;;  %v1326_v10 = vpop.permute.xlu0 %1325 }
 0x2ef   : > { %1292 = vst.msk [vmem:[%s1808_s29] sm:$0xff] %vm1291_vm2, %v1289_v9 }
 0x2f2   : > { %v1294_v11 = vpop.permute.xlu1 %1293  ;;  %v1330_v12 = vpop.permute.xlu0 %1329 }
 0x2f3   : > { %1297 = vst.msk [vmem:[%s1808_s29] sm:$0xff] %vm1296_vm3, %v1294_v11 }
 0x2f6   : > { %v1310_v13 = vpop.permute.xlu1 %1309  ;;  %v1338_v14 = vpop.permute.xlu0 %1337 }
 0x2f7   : > { %1312 = vst.msk [vmem:[%s1808_s29 + $0x8] sm:$0xff] %vm1265_vm13, %v1310_v13 }
 0x2f8   : > { %1316 = vst.msk [vmem:[%s1808_s29 + $0x8] sm:$0xff] %vm1271_vm14, %v1314_v4 }
 0x2f9   : > { %1320 = vst.msk [vmem:[%s1808_s29 + $0x8] sm:$0xff] %vm1276_vm15, %v1318_v6 }
 0x2fa   : > { %1324 = vst.msk [vmem:[%s1808_s29 + $0x8] sm:$0xff] %vm1281_vm0, %v1322_v8  ;;  %v1336_v15 = vpop.permute.xlu1 %1335  ;;  %v1344_v18 = vpop.permute.xlu0 %1343 }
 0x2fb   : > { %1328 = vst.msk [vmem:[%s1808_s29 + $0x8] sm:$0xff] %vm1286_vm1, %v1326_v10  ;;  %v1340_v16 = vsel %vm1339_vm4, %v1336_v15, %v1338_v14 }
 0x2fc   : > { %1332 = vst.msk [vmem:[%s1808_s29 + $0x8] sm:$0xff] %vm1291_vm2, %v1330_v12 }
 0x2fd   : > { %1342 = vst.msk [vmem:[%s1808_s29 + $0x8] sm:$0xff] %vm1296_vm3, %v1340_v16 }
 0x2fe   : > { %1346 = vst.msk [vmem:[%s1808_s29 + $0x8] sm:$0xff] %vm1307_vm5, %v1344_v18  ;;  %v1303_v19 = vpop.permute.xlu1 %1302 }
 0x2ff   : > { %v1305_v20 = vsel %vm1304_vm6, %v1301_v0, %v1303_v19 }
 0x300   : > { %1308 = vst.msk [vmem:[%s1808_s29] sm:$0xff] %vm1307_vm5, %v1305_v20 }
 0x301 PF: > { %s15_s18 = sadd.s32 1, %s1570_s18  }
 0x302   : > { %p12_p4 = scmp.ge.s32.totalorder %s15_s18, 4  }
 0x304   :  { %14 = sbr.rel (!%p12_p4) target bundleno = 1 (0x1), region = 70 }

</bundles_post_ra>
